<compile_context>
chip_gen: v6e
topology: v6e:2x2x1
jax: 0.10.0
libtpu: 0.0.40
codegen_flags: <defaults>
</compile_context>

<pallas_src>
import functools

import jax
import jax.numpy as jnp
from jax import lax
from jax.experimental import pallas as pl
from jax.experimental.pallas import tpu as pltpu

LANE = 128
SUBLANE = 8
ACC_ROWS = 32          # 4 independent (8,128) accumulation chains per split
MAX_BLOCK_ROWS = 8192  # (8192,128) f32 = 4 MiB per input per pipeline buffer

# Approx reciprocal on the EUP (rel. error ~2^-12 on the summed loss).
# Set False for a bit-faithful exact f32 divide.
USE_APPROX_RECIPROCAL = True


def _num_tensorcores() -> int:
    """Best-effort TensorCore-per-device count (2 on v7x / megacore, else 1)."""
    try:
        info = pltpu.get_tpu_info()
        for name in ("num_cores", "core_count", "num_tensorcores",
                     "tensorcore_count", "num_cores_per_chip", "cores_per_chip"):
            v = getattr(info, name, None)
            if isinstance(v, int) and 1 <= v <= 8:
                return v
    except Exception:
        pass
    try:
        kind = jax.devices()[0].device_kind.lower()
        if ("v7" in kind) or ("v5p" in kind) or ("v4" in kind):
            return 2
    except Exception:
        pass
    return 1


def _tone_map_l1_kernel(x_ref, y_ref, acc_ref, *, rows, block_rows, acc_rows,
                        blocks_per_split, n_split, need_mask, use_approx_recip):
    """Accumulate partial sums of |x/(x+1) - y/(y+1)| into acc_ref.

    x_ref/y_ref : VMEM tiles (block_rows, LANE), original input dtype.
    acc_ref     : resident OUTPUT block (acc_rows, LANE) f32 -- accumulator
                  across the "arbitrary" reduction axis (axis 1).
    """
    i = pl.program_id(1)  # reduction step within this split

    @pl.when(i == 0)
    def _init():
        acc_ref[...] = jnp.zeros_like(acc_ref)

    x = x_ref[...].astype(jnp.float32)
    y = y_ref[...].astype(jnp.float32)

    # |x/(x+1) - y/(y+1)| == |x - y| / |(x+1)*(y+1)|  (one divide per element)
    num = jnp.abs(x - y)
    den = jnp.abs((x + 1.0) * (y + 1.0))
    if use_approx_recip:
        d = num * pl.reciprocal(den, approx=True)   # EUP slot, VALU stays free
    else:
        d = num / den

    if need_mask:
        # Single select on the final value: rows beyond the true extent
        # (partial / clamped surplus blocks) contribute exactly 0; the select
        # discards any inf/nan produced by garbage rows.
        c = pl.program_id(0) if n_split > 1 else 0
        row0 = (c * blocks_per_split + i) * block_rows  # UNclamped on purpose
        row_ids = row0 + lax.broadcasted_iota(jnp.int32, (block_rows, LANE), 0)
        d = jnp.where(row_ids < rows, d, 0.0)

    # Fold the tile onto the (acc_rows, LANE) accumulator with plain VPU adds:
    # acc_rows=32 gives 4 independent add chains (ILP) vs one.
    acc_ref[...] += d.reshape(block_rows // acc_rows, acc_rows, LANE).sum(axis=0)


def tone_mapping_loss(input_data: jnp.ndarray, target: jnp.ndarray) -> jnp.ndarray:
    """JAX/Pallas equivalent of ToneMappingLoss().forward(input_data, target)."""
    assert input_data.shape == target.shape, "input/target shape mismatch"
    n_true = input_data.size
    inv_n = 1.0 / float(n_true)  # static; no divide in the kernel

    xf = input_data.reshape(-1)
    yf = target.reshape(-1)

    # Pad only when numel is not a multiple of LANE (or the input is tiny);
    # zero padding contributes exactly 0 to the |diff| sum.
    # TODO(synk): a fully copy-free ragged tail would need manual 1-D HBM DMA
    # into a 2-D VMEM tile; image-shaped inputs (numel % 128 == 0) never copy.
    flat_len = max(pl.cdiv(n_true, LANE) * LANE, SUBLANE * LANE)
    if flat_len != n_true:
        xf = jnp.pad(xf, (0, flat_len - n_true))
        yf = jnp.pad(yf, (0, flat_len - n_true))

    rows = flat_len // LANE  # >= 8
    x2 = xf.reshape(rows, LANE)
    y2 = yf.reshape(rows, LANE)

    block_rows = min(MAX_BLOCK_ROWS, (rows // SUBLANE) * SUBLANE)  # mult of 8, <= rows
    acc_rows = ACC_ROWS if block_rows % ACC_ROWS == 0 else SUBLANE
    blocks_total = pl.cdiv(rows, block_rows)

    elem_bytes = jnp.dtype(x2.dtype).itemsize
    block_bytes = block_rows * LANE * elem_bytes
    # 2 inputs x 2 pipeline buffers + accumulator + slack; cap well under physical VMEM.
    vmem_limit = int(min(100 << 20, max(32 << 20, 5 * block_bytes + (2 << 20))))

    n_elems = rows * LANE
    cost = pl.CostEstimate(
        flops=7 * n_elems,
        transcendentals=n_elems if USE_APPROX_RECIPROCAL else 0,
        bytes_accessed=2 * n_elems * elem_bytes + 2 * ACC_ROWS * LANE * 4,
    )

    def run(n_split, semantics):
        blocks_per_split = pl.cdiv(blocks_total, n_split)
        covered_rows = n_split * blocks_per_split * block_rows
        need_mask = covered_rows != rows  # invariant: any surplus/partial block is masked

        def in_index(c, i):
            # Clamp so a surplus split iteration never requests a block starting
            # past the array end; its contribution is fully masked in-kernel.
            b = jnp.minimum(c * blocks_per_split + i, blocks_total - 1)
            return (b, 0)

        kernel = functools.partial(
            _tone_map_l1_kernel,
            rows=rows, block_rows=block_rows, acc_rows=acc_rows,
            blocks_per_split=blocks_per_split, n_split=n_split,
            need_mask=need_mask, use_approx_recip=USE_APPROX_RECIPROCAL,
        )

        return pl.pallas_call(
            kernel,
            out_shape=jax.ShapeDtypeStruct((n_split * acc_rows, LANE), jnp.float32),
            grid_spec=pltpu.PrefetchScalarGridSpec(
                num_scalar_prefetch=0,
                grid=(n_split, blocks_per_split),
                in_specs=[
                    pl.BlockSpec((block_rows, LANE), in_index),
                    pl.BlockSpec((block_rows, LANE), in_index),
                ],
                out_specs=pl.BlockSpec((acc_rows, LANE), lambda c, i: (c, 0)),
            ),
            compiler_params=pltpu.CompilerParams(
                dimension_semantics=semantics,
                vmem_limit_bytes=vmem_limit,
            ),
            cost_estimate=cost,
        )(x2, y2)

    # Engage the second TensorCore (v7x / megacore chips) whenever there are
    # >= 2 blocks; only CORE_PARALLEL actually shards a grid axis across cores.
    core_par = getattr(pltpu, "CORE_PARALLEL", None)
    arb = getattr(pltpu, "ARBITRARY", "arbitrary")
    if _num_tensorcores() >= 2 and blocks_total >= 2 and core_par is not None:
        try:
            partials = run(2, (core_par, arb))
        except Exception:
            # Safe serial fallback if core-parallel lowering is unavailable.
            partials = run(1, ("arbitrary", "arbitrary"))
    else:
        partials = run(1, ("arbitrary", "arbitrary"))

    # Tiny final reduce (<= 2*32*128 f32) + 1/N scale in the wrapper.
    return jnp.sum(partials) * jnp.float32(inv_n)


if __name__ == "__main__":
    key = jax.random.PRNGKey(0)
    k1, k2 = jax.random.split(key)
    # NCHW, small shapes consistent with an image-loss module.
    x = jax.random.uniform(k1, (2, 4, 16, 16), dtype=jnp.float32) * 4.0  # HDR-ish, non-negative
    y = jax.random.uniform(k2, (2, 4, 16, 16), dtype=jnp.float32) * 4.0

    loss = tone_mapping_loss(x, y)
    jax.block_until_ready(loss)

    # Pure-JAX reference check.
    ref = jnp.mean(jnp.abs(x / (x + 1.0) - y / (y + 1.0)))
    rtol = 2e-3 if USE_APPROX_RECIPROCAL else 1e-5
    assert jnp.allclose(loss, ref, rtol=rtol, atol=1e-5), (loss, ref)

    print("KERNEL_OK")
</pallas_src>

<mosaic_0001>
module attributes {stable_mosaic.version = 11 : i64} {
  func.func @_tone_map_l1_kernel(%arg0: i32, %arg1: i32, %arg2: memref<16x128xf32, #tpu.memory_space<vmem>>, %arg3: memref<16x128xf32, #tpu.memory_space<vmem>>, %arg4: memref<8x128xf32, #tpu.memory_space<vmem>>) attributes {dimension_semantics = [#tpu.dimension_semantics<arbitrary>, #tpu.dimension_semantics<arbitrary>], iteration_bounds = array<i64: 1, 1>, scalar_prefetch = 0 : i64, scratch_operands = 0 : i64, tpu.core_type = #tpu.core_type<tc>, window_params = [{transform_indices = @transform_0, window_bounds = array<i64: 16, 128>}, {transform_indices = @transform_1, window_bounds = array<i64: 16, 128>}, {transform_indices = @transform_2, window_bounds = array<i64: 8, 128>}]} {
    %c0_i32 = arith.constant 0 : i32
    %0 = arith.cmpi eq, %arg1, %c0_i32 : i32
    %1 = arith.extui %0 : i1 to i32
    %c0_i32_0 = arith.constant 0 : i32
    %2 = arith.cmpi ne, %1, %c0_i32_0 : i32
    scf.if %2 {
      %cst_10 = arith.constant 0.000000e+00 : f32
      %20 = vector.broadcast %cst_10 : f32 to vector<8x128xf32>
      %c0_11 = arith.constant 0 : index
      %c0_12 = arith.constant 0 : index
      %21 = vector.load %arg4[%c0_11, %c0_12] : memref<8x128xf32, #tpu.memory_space<vmem>>, vector<8x128xf32>
      tpu.vector_store %arg4[%c0_11, %c0_12], %20 {strides = array<i32>} : memref<8x128xf32, #tpu.memory_space<vmem>>, vector<8x128xf32>,
    } else {
    }
    %c0 = arith.constant 0 : index
    %c0_1 = arith.constant 0 : index
    %3 = vector.load %arg2[%c0, %c0_1] : memref<16x128xf32, #tpu.memory_space<vmem>>, vector<16x128xf32>
    %c0_2 = arith.constant 0 : index
    %c0_3 = arith.constant 0 : index
    %4 = vector.load %arg3[%c0_2, %c0_3] : memref<16x128xf32, #tpu.memory_space<vmem>>, vector<16x128xf32>
    %5 = arith.subf %3, %4 : vector<16x128xf32>
    %6 = math.absf %5 : vector<16x128xf32>
    %cst = arith.constant 1.000000e+00 : f32
    %7 = vector.broadcast %cst : f32 to vector<16x128xf32>
    %8 = arith.addf %3, %7 : vector<16x128xf32>
    %cst_4 = arith.constant 1.000000e+00 : f32
    %9 = vector.broadcast %cst_4 : f32 to vector<16x128xf32>
    %10 = arith.addf %4, %9 : vector<16x128xf32>
    %11 = arith.mulf %8, %10 : vector<16x128xf32>
    %12 = math.absf %11 : vector<16x128xf32>
    %13 = tpu.reciprocal %12 {approx = true} : vector<16x128xf32> -> vector<16x128xf32>
    %14 = arith.mulf %6, %13 : vector<16x128xf32>
    %c0_5 = arith.constant 0 : index
    %c0_6 = arith.constant 0 : index
    %15 = vector.load %arg4[%c0_5, %c0_6] : memref<8x128xf32, #tpu.memory_space<vmem>>, vector<8x128xf32>
    %16 = vector.shape_cast %14 : vector<16x128xf32> to vector<2x8x128xf32>
    %cst_7 = arith.constant dense<0.000000e+00> : vector<8x128xf32>
    %17 = vector.multi_reduction <add>, %16, %cst_7 [0] : vector<2x8x128xf32> to vector<8x128xf32>
    %18 = arith.addf %15, %17 : vector<8x128xf32>
    %c0_8 = arith.constant 0 : index
    %c0_9 = arith.constant 0 : index
    %19 = vector.load %arg4[%c0_8, %c0_9] : memref<8x128xf32, #tpu.memory_space<vmem>>, vector<8x128xf32>
    tpu.vector_store %arg4[%c0_8, %c0_9], %18 {strides = array<i32>} : memref<8x128xf32, #tpu.memory_space<vmem>>, vector<8x128xf32>,
    return
  }
  func.func @transform_0(%arg0: i32, %arg1: i32) -> (i32, i32) {
    %c1_i32 = arith.constant 1 : i32
    %0 = arith.muli %arg0, %c1_i32 : i32
    %1 = arith.addi %0, %arg1 : i32
    %c0_i32 = arith.constant 0 : i32
    %2 = arith.minsi %1, %c0_i32 : i32
    %c0_i32_0 = arith.constant 0 : i32
    %c0_i32_1 = arith.constant 0 : i32
    return %2, %c0_i32_0 : i32, i32
  }
  func.func @transform_1(%arg0: i32, %arg1: i32) -> (i32, i32) {
    %c1_i32 = arith.constant 1 : i32
    %0 = arith.muli %arg0, %c1_i32 : i32
    %1 = arith.addi %0, %arg1 : i32
    %c0_i32 = arith.constant 0 : i32
    %2 = arith.minsi %1, %c0_i32 : i32
    %c0_i32_0 = arith.constant 0 : i32
    %c0_i32_1 = arith.constant 0 : i32
    return %2, %c0_i32_0 : i32, i32
  }
  func.func @transform_2(%arg0: i32, %arg1: i32) -> (i32, i32) {
    %c0_i32 = arith.constant 0 : i32
    %c0_i32_0 = arith.constant 0 : i32
    return %arg0, %c0_i32 : i32, i32
  }
}

</mosaic_0001>

<bundles_post_ra>
// kernel: tpu_custom_call.1
= control target key start
LH: loop header
LB: loop body
LE: loop exit
PB: predicated region body
PF: predicated region fallthrough
CT: control target
= control target key end

     0   :  { %7 = vsyncpa [#allocation3], 0  ;;  %s214_s0 = inlined_call_operand.hbm [shape: f32[16,128], index: 0, kind: input, shape index: {}]   ;;  %s215_s1 = inlined_call_operand.hbm [shape: f32[16,128], index: 1, kind: input, shape index: {}]   ;;  %s216_s2 = inlined_call_operand.hbm [shape: f32[8,128], index: 2, kind: output, shape index: {}]  }
   0x1   :  { %8 = vsyncpa [#allocation6], 0 }
   0x2   :  { %9 = vsyncpa [#allocation4], 0  ;;  %s185_s9 = smov [#allocation2]  }
   0x3   :  { %s21_s10 = sshll.u32 %s185_s9, 4  ;;  %s22_s10 = int_to_ptr.vmem [resolvable:$true] %s21_s10 }
   0x4   :  { %s127_s11 = scalar_lea.vmem %s22_s10, 256  ;;  %p132_p1 = scmp.lt.s32.totalorder %s22_s10, %s22_s10 }
   0x5   :  { %p128_p0 = scmp.ne.s32.totalorder %s22_s10, %s127_s11  ;;  %p133_p2 = scmp.lt.s32.totalorder %s127_s11, %s127_s11 }
   0x7   :  { %p134_p3 = por %p133_p2, %p132_p1 }
   0x9   :  { %p135_p4 = pnand %p134_p3, %p128_p0 }
   0xb   :  { %138 = shalt.err (!%p135_p4)
}
   0xc   :  { %s186_s12 = smov 128   ;;  %s187_s13 = smov 8  }
   0xd   :  { %27 = dma.hbm_to_vmem [thread:$0]  %s214_s0, 256, %s22_s10, [#allocation3], %s186_s12, %s186_s12, %s187_s13  }
   0xe   :  { %s188_s16 = smov [#allocation5]  }
   0xf   :  { %s39_s17 = sshll.u32 %s188_s16, 4  ;;  %s40_s17 = int_to_ptr.vmem [resolvable:$true] %s39_s17 }
  0x10   :  { %s147_s18 = scalar_lea.vmem %s40_s17, 256  ;;  %p152_p6 = scmp.lt.s32.totalorder %s40_s17, %s40_s17 }
  0x11   :  { %p148_p5 = scmp.ne.s32.totalorder %s40_s17, %s147_s18  ;;  %p153_p7 = scmp.lt.s32.totalorder %s147_s18, %s147_s18 }
  0x13   :  { %p154_p8 = por %p153_p7, %p152_p6 }
  0x15   :  { %p155_p9 = pnand %p154_p8, %p148_p5 }
  0x17   :  { %158 = shalt.err (!%p155_p9)
}
  0x18   :  { %45 = dma.hbm_to_vmem [thread:$0]  %s215_s1, 256, %s40_s17, [#allocation6], %s186_s12, %s186_s12, %s187_s13  }
  0x19   :  { %179 = dma.done.wait [#allocation3], 256  }
  0x1a   :  { %180 = vsyncadd [#allocation3], 4294967040 }
  0x1b   :  { %181 = dma.done.wait [#allocation6], 256  }
  0x1c   :  { %182 = vsyncadd [#allocation6], 4294967040  ;;  %v65_v0 = vld [vmem:[#allocation2] sm:$0xff]  ;;  %v66_v1 = vld [vmem:[#allocation2 + $0x8] sm:$0xff]  ;;  %s189_s0 = smov [#allocation7]  }
  0x1d   :  { %v67_v2 = vld [vmem:[#allocation5] sm:$0xff]  ;;  %v68_v3 = vld [vmem:[#allocation5 + $0x8] sm:$0xff]  ;;  %v73_v4 = vadd.f32 1.0, %v65_v0  ;;  %v74_v5 = vadd.f32 1.0, %v66_v1  ;;  %s95_s1 = sshll.u32 %s189_s0, 4  ;;  %s96_s1 = int_to_ptr.vmem [resolvable:$true] %s95_s1 }
  0x1e   :  { %v75_v6 = vadd.f32 1.0, %v67_v2  ;;  %v76_v7 = vadd.f32 1.0, %v68_v3  ;;  %v69_v12 = vsub.f32 %v65_v0, %v67_v2  ;;  %v70_v13 = vsub.f32 %v66_v1, %v68_v3  ;;  %s159_s21 = scalar_lea.vmem %s96_s1, 128  ;;  %p164_p11 = scmp.lt.s32.totalorder %s96_s1, %s96_s1 }
  0x1f   :  { %p160_p10 = scmp.ne.s32.totalorder %s96_s1, %s159_s21  ;;  %p165_p12 = scmp.lt.s32.totalorder %s159_s21, %s159_s21 }
  0x20   :  { %v77_v8 = vmul.f32 %v75_v6, %v73_v4  ;;  %v78_v9 = vmul.f32 %v76_v7, %v74_v5  ;;  %v71_v14 = vand.u32 2147483647, %v69_v12  ;;  %v72_v15 = vand.u32 2147483647, %v70_v13 }
  0x21   :  { %p166_p13 = por %p165_p12, %p164_p11 }
  0x22   :  { %v79_v10 = vand.u32 2147483647, %v77_v8  ;;  %v80_v11 = vand.u32 2147483647, %v78_v9 }
  0x23   :  { %p167_p0 = pnand %p166_p13, %p160_p10 }
  0x24   :  { %115 = vrcp.f32 %v79_v10 }
  0x25   :  { %117 = vrcp.f32 %v80_v11 }
  0x31   :  { %v116_v16 = vpop.eup %115 }
  0x32   :  { %v118_v17 = vpop.eup %117  ;;  %v83_v18 = vmul.f32 %v116_v16, %v71_v14 }
  0x33   :  { %v84_v19 = vmul.f32 %v118_v17, %v72_v15 }
  0x35   :  { %v86_v20 = vadd.f32 %v84_v19, %v83_v18 }
  0x37   :  { %88 = vst [vmem:[#allocation7] sm:$0xff] %v86_v20 }
  0x38   :  { %170 = shalt.err (!%p167_p0)
}
  0x39   :  { %98 = dma.vmem_to_hbm [thread:$0]  %s96_s1, 128, %s216_s2, [#allocation4]  }
  0x3a   :  { %183 = dma.done.wait [#allocation4], 128  }
  0x3b   :  { %184 = vsyncadd [#allocation4], 4294967168 }
  0x3c   :  { %102 = vsyncpa [#allocation3], 1 }
  0x3d   :  { %103 = vsyncpa [#allocation6], 1 }
  0x3e   :  { %104 = vsyncpa [#allocation4], 1 }

</bundles_post_ra>
